<compile_context>
chip_gen: v5e
topology: v5e:2x2
jax: 0.10.0
libtpu: 0.0.40
codegen_flags: <defaults>
</compile_context>

<pallas_src>
import jax
import jax.numpy as jnp
from jax import lax
from jax.experimental import pallas as pl
from jax.experimental.pallas import tpu as pltpu


def _conv_band_weights(w_oihw, in_width, out_pad=None):
    """Banded weight matrices for a 3x3 valid conv expressed as lane-axis matmuls.

    Returns an array of shape (3, in_width*Cin, out_cols) with
        band[ky, (ow+kx)*Cin + cin, ow*Cout + co] = w[co, cin, ky, kx]
    so that, for an input row-slab X with columns (w*Cin + cin),
        conv_out[row, ow*Cout + co] = sum_ky X[row+ky, :] @ band[ky].
    out_cols = (in_width-2)*Cout, optionally zero-padded to `out_pad` columns.
    """
    Cout, Cin, KH, KW = w_oihw.shape
    Wo = in_width - KW + 1
    ow = jnp.arange(Wo)
    bands = []
    for ky in range(KH):
        band = jnp.zeros((in_width, Cin, Wo, Cout), w_oihw.dtype)
        for kx in range(KW):
            val = jnp.broadcast_to(w_oihw[:, :, ky, kx].T, (Wo, Cin, Cout))
            band = band.at[ow + kx, :, ow, :].set(val)
        bands.append(band.reshape(in_width * Cin, Wo * Cout))
    out = jnp.stack(bands, axis=0)
    if out_pad is not None and out_pad > Wo * Cout:
        out = jnp.pad(out, ((0, 0), (0, 0), (0, out_pad - Wo * Cout)))
    return out


def _block_kernel(x_ref, band1_ref, b1_ref, band2_ref, b2_ref, o_ref):
    # x_ref    : (B*H, W*Cin)        lane-dense slab of B packed images (NHWC rows)
    # band1_ref: (3, W*Cin, Wo1*C1)  conv1 banded weights, one matrix per vertical tap
    # b1_ref   : (1, Wo1*C1)         conv1 bias tiled per output column
    # band2_ref: (3, Wo1*C1, OUTP)   conv2 banded weights, columns zero-padded to OUTP
    # b2_ref   : (1, OUTP)           conv2 bias tiled + zero-padded
    # o_ref    : (1, B*H-4, OUTP)    output slab; rows with (r % H) >= Ho2 are garbage
    #                                and are dropped by the wrapper.
    BH = x_ref.shape[0]
    M1 = BH - 2                      # conv1 rows carried (incl. per-image garbage rows)
    M2 = BH - 4                      # conv2 rows carried

    x = x_ref[...]

    # conv1: vertical taps = static row-shifted slices; horizontal taps + channels are
    # inside the banded weights -> three MXU matmuls, zero im2col shuffling.
    h = jnp.dot(x[0:M1, :], band1_ref[0], preferred_element_type=jnp.float32)
    h = h + jnp.dot(x[1:M1 + 1, :], band1_ref[1], preferred_element_type=jnp.float32)
    h = h + jnp.dot(x[2:M1 + 2, :], band1_ref[2], preferred_element_type=jnp.float32)
    h = jnp.maximum(h + b1_ref[...], 0.0)            # (M1, Wo1*C1), lane-dense, in vregs

    # conv2: same banded form on the lane-dense intermediate; bias fused in epilogue.
    y = jnp.dot(h[0:M2, :], band2_ref[0], preferred_element_type=jnp.float32)
    y = y + jnp.dot(h[1:M2 + 1, :], band2_ref[1], preferred_element_type=jnp.float32)
    y = y + jnp.dot(h[2:M2 + 2, :], band2_ref[2], preferred_element_type=jnp.float32)
    y = y + b2_ref[...]                               # (M2, OUTP), 128-lane multiple

    o_ref[0] = y.astype(o_ref.dtype)                  # unmasked, lane-dense store


def block_forward(x_nchw, params, *, b_step=None, b_cap=8):
    # Matches torch Block.forward: conv2(relu(conv1(x))), both 3x3 valid, stride 1.
    N, Cin, H, W = x_nchw.shape
    C1 = params["conv1_w"].shape[0]
    C2 = params["conv2_w"].shape[0]
    Ho1, Wo1 = H - 2, W - 2
    Ho2, Wo2 = H - 4, W - 4
    out_cols = Wo2 * C2
    out_pad = max(128, ((out_cols + 127) // 128) * 128)   # lane-dense store width

    # ---- images per grid step: fat steps amortize ~0.35us/step overhead, but keep ----
    # ---- >= 2 steps when possible so v7x's two TensorCores both get work.         ----
    if b_step is None:
        divs = [d for d in range(1, N + 1) if N % d == 0 and d <= b_cap]
        multi = [d for d in divs if N // d >= 2 and (d * H) % 8 == 0]
        b_step = max(multi) if multi else N
    assert N % b_step == 0
    S = N // b_step
    BH = b_step * H
    if S > 1:
        assert BH % 8 == 0, "row block must be sublane-aligned; pick another b_step"

    # ---- lane-dense host-side layouts (pure XLA, tiny) ----
    x2d = jnp.transpose(x_nchw, (0, 2, 3, 1)).reshape(N * H, W * Cin)     # (N*H, W*Cin)
    band1 = _conv_band_weights(params["conv1_w"], W)                      # (3, W*Cin, Wo1*C1)
    band2 = _conv_band_weights(params["conv2_w"], Wo1, out_pad)           # (3, Wo1*C1, OUTP)
    b1 = jnp.tile(params["conv1_b"], Wo1).reshape(1, Wo1 * C1)
    b2 = jnp.pad(jnp.tile(params["conv2_b"], Wo2),
                 (0, out_pad - out_cols)).reshape(1, out_pad)

    M2 = BH - 4
    out = pl.pallas_call(
        _block_kernel,
        out_shape=jax.ShapeDtypeStruct((S, M2, out_pad), x_nchw.dtype),
        grid_spec=pltpu.PrefetchScalarGridSpec(
            num_scalar_prefetch=0,
            grid=(S,),                                      # one step per B_STEP images
            in_specs=[
                pl.BlockSpec((BH, W * Cin), lambda s: (s, 0)),
                pl.BlockSpec((3, W * Cin, Wo1 * C1), lambda s: (0, 0, 0)),
                pl.BlockSpec((1, Wo1 * C1), lambda s: (0, 0)),
                pl.BlockSpec((3, Wo1 * C1, out_pad), lambda s: (0, 0, 0)),
                pl.BlockSpec((1, out_pad), lambda s: (0, 0)),
            ],
            out_specs=pl.BlockSpec((1, M2, out_pad), lambda s: (s, 0, 0)),
        ),
        compiler_params=pltpu.CompilerParams(
            dimension_semantics=("parallel",)),             # v7x: shard steps on 2 TCs
    )(x2d, band1, b1, band2, b2)

    # Drop the cross-image garbage rows and the lane padding, then go back to NCHW.
    rows = (jnp.arange(b_step)[:, None] * H + jnp.arange(Ho2)[None, :]).reshape(-1)
    y = out[:, rows, :out_cols]                             # (S, b_step*Ho2, Wo2*C2)
    y = y.reshape(N, Ho2, Wo2, C2)
    return jnp.transpose(y, (0, 3, 1, 2))                   # (N, C2, Ho2, Wo2)


def _ref_forward(x_nchw, params):
    # Pure-JAX reference (lax conv) for a correctness check.
    dn = lax.conv_dimension_numbers(x_nchw.shape, params["conv1_w"].shape,
                                    ("NCHW", "OIHW", "NCHW"))
    h = lax.conv_general_dilated(x_nchw, params["conv1_w"], (1, 1), "VALID",
                                 dimension_numbers=dn)
    h = jnp.maximum(h + params["conv1_b"][None, :, None, None], 0.0)
    dn2 = lax.conv_dimension_numbers(h.shape, params["conv2_w"].shape,
                                     ("NCHW", "OIHW", "NCHW"))
    y = lax.conv_general_dilated(h, params["conv2_w"], (1, 1), "VALID",
                                 dimension_numbers=dn2)
    return y + params["conv2_b"][None, :, None, None]


if __name__ == "__main__":
    key = jax.random.PRNGKey(0)
    k1, k2, k3, k4, kx = jax.random.split(key, 5)
    in_ch, out_ch = 4, 8
    N, H, W = 2, 16, 16

    # Deterministic synthetic parameters (shapes follow nn.Conv2d(in_ch, out_ch, 3)).
    params = {
        "conv1_w": jax.random.normal(k1, (out_ch, in_ch, 3, 3), jnp.float32) * 0.1,
        "conv1_b": jax.random.normal(k2, (out_ch,), jnp.float32) * 0.1,
        "conv2_w": jax.random.normal(k3, (out_ch, out_ch, 3, 3), jnp.float32) * 0.1,
        "conv2_b": jax.random.normal(k4, (out_ch,), jnp.float32) * 0.1,
    }
    x = jax.random.normal(kx, (N, in_ch, H, W), jnp.float32)

    y = jax.block_until_ready(block_forward(x, params))
    assert y.shape == (N, out_ch, H - 4, W - 4)

    y_ref = _ref_forward(x, params)
    assert jnp.allclose(y, y_ref, atol=1e-4, rtol=1e-4), "mismatch vs lax reference"
    print("KERNEL_OK")
</pallas_src>

<mosaic_0001>
module attributes {stable_mosaic.version = 11 : i64} {
  func.func @_block_kernel(%arg0: i32, %arg1: memref<16x64xf32, #tpu.memory_space<vmem>>, %arg2: memref<3x64x112xf32, #tpu.memory_space<vmem>>, %arg3: memref<1x112xf32, #tpu.memory_space<vmem>>, %arg4: memref<3x112x128xf32, #tpu.memory_space<vmem>>, %arg5: memref<1x128xf32, #tpu.memory_space<vmem>>, %arg6: memref<1x12x128xf32, #tpu.memory_space<vmem>>) attributes {dimension_semantics = [#tpu.dimension_semantics<parallel>], iteration_bounds = array<i64: 2>, scalar_prefetch = 0 : i64, scratch_operands = 0 : i64, tpu.core_type = #tpu.core_type<tc>, window_params = [{transform_indices = @transform_0, window_bounds = array<i64: 16, 64>}, {pipeline_mode = #tpu.pipeline_mode<synchronous>, transform_indices = @transform_1, window_bounds = array<i64: 3, 64, 112>}, {pipeline_mode = #tpu.pipeline_mode<synchronous>, transform_indices = @transform_2, window_bounds = array<i64: 1, 112>}, {pipeline_mode = #tpu.pipeline_mode<synchronous>, transform_indices = @transform_3, window_bounds = array<i64: 3, 112, 128>}, {pipeline_mode = #tpu.pipeline_mode<synchronous>, transform_indices = @transform_4, window_bounds = array<i64: 1, 128>}, {transform_indices = @transform_5, window_bounds = array<i64: 1, 12, 128>}]} {
    %c0 = arith.constant 0 : index
    %c0_0 = arith.constant 0 : index
    %0 = vector.load %arg1[%c0, %c0_0] : memref<16x64xf32, #tpu.memory_space<vmem>>, vector<16x64xf32>
    %1 = vector.extract_strided_slice %0 {offsets = [0, 0], sizes = [14, 64], strides = [1, 1]} : vector<16x64xf32> to vector<14x64xf32>
    %c0_1 = arith.constant 0 : index
    %c0_2 = arith.constant 0 : index
    %c0_3 = arith.constant 0 : index
    %2 = vector.load %arg2[%c0_1, %c0_2, %c0_3] : memref<3x64x112xf32, #tpu.memory_space<vmem>>, vector<1x64x112xf32>
    %3 = vector.shape_cast %2 : vector<1x64x112xf32> to vector<64x112xf32>
    %cst = arith.constant dense<0.000000e+00> : vector<14x112xf32>
    %4 = tpu.matmul %1, %3, %cst {dimension_numbers = #tpu.dot_dimension_numbers<[1], [0], [0], [1], [0, 0, 1, 1], [], []>} : vector<14x64xf32>, vector<64x112xf32>, vector<14x112xf32> -> vector<14x112xf32>
    %5 = vector.extract_strided_slice %0 {offsets = [1, 0], sizes = [14, 64], strides = [1, 1]} : vector<16x64xf32> to vector<14x64xf32>
    %c1 = arith.constant 1 : index
    %c0_4 = arith.constant 0 : index
    %c0_5 = arith.constant 0 : index
    %6 = vector.load %arg2[%c1, %c0_4, %c0_5] : memref<3x64x112xf32, #tpu.memory_space<vmem>>, vector<1x64x112xf32>
    %7 = vector.shape_cast %6 : vector<1x64x112xf32> to vector<64x112xf32>
    %cst_6 = arith.constant dense<0.000000e+00> : vector<14x112xf32>
    %8 = tpu.matmul %5, %7, %cst_6 {dimension_numbers = #tpu.dot_dimension_numbers<[1], [0], [0], [1], [0, 0, 1, 1], [], []>} : vector<14x64xf32>, vector<64x112xf32>, vector<14x112xf32> -> vector<14x112xf32>
    %9 = arith.addf %4, %8 : vector<14x112xf32>
    %10 = vector.extract_strided_slice %0 {offsets = [2, 0], sizes = [14, 64], strides = [1, 1]} : vector<16x64xf32> to vector<14x64xf32>
    %c2 = arith.constant 2 : index
    %c0_7 = arith.constant 0 : index
    %c0_8 = arith.constant 0 : index
    %11 = vector.load %arg2[%c2, %c0_7, %c0_8] : memref<3x64x112xf32, #tpu.memory_space<vmem>>, vector<1x64x112xf32>
    %12 = vector.shape_cast %11 : vector<1x64x112xf32> to vector<64x112xf32>
    %cst_9 = arith.constant dense<0.000000e+00> : vector<14x112xf32>
    %13 = tpu.matmul %10, %12, %cst_9 {dimension_numbers = #tpu.dot_dimension_numbers<[1], [0], [0], [1], [0, 0, 1, 1], [], []>} : vector<14x64xf32>, vector<64x112xf32>, vector<14x112xf32> -> vector<14x112xf32>
    %14 = arith.addf %9, %13 : vector<14x112xf32>
    %c0_10 = arith.constant 0 : index
    %c0_11 = arith.constant 0 : index
    %15 = vector.load %arg3[%c0_10, %c0_11] : memref<1x112xf32, #tpu.memory_space<vmem>>, vector<1x112xf32>
    %16 = vector.broadcast %15 : vector<1x112xf32> to vector<14x112xf32>
    %17 = arith.addf %14, %16 : vector<14x112xf32>
    %cst_12 = arith.constant 0.000000e+00 : f32
    %18 = vector.broadcast %cst_12 : f32 to vector<14x112xf32>
    %19 = arith.maximumf %17, %18 : vector<14x112xf32>
    %20 = vector.extract_strided_slice %19 {offsets = [0, 0], sizes = [12, 112], strides = [1, 1]} : vector<14x112xf32> to vector<12x112xf32>
    %c0_13 = arith.constant 0 : index
    %c0_14 = arith.constant 0 : index
    %c0_15 = arith.constant 0 : index
    %21 = vector.load %arg4[%c0_13, %c0_14, %c0_15] : memref<3x112x128xf32, #tpu.memory_space<vmem>>, vector<1x112x128xf32>
    %22 = vector.shape_cast %21 : vector<1x112x128xf32> to vector<112x128xf32>
    %cst_16 = arith.constant dense<0.000000e+00> : vector<12x128xf32>
    %23 = tpu.matmul %20, %22, %cst_16 {dimension_numbers = #tpu.dot_dimension_numbers<[1], [0], [0], [1], [0, 0, 1, 1], [], []>} : vector<12x112xf32>, vector<112x128xf32>, vector<12x128xf32> -> vector<12x128xf32>
    %24 = vector.extract_strided_slice %19 {offsets = [1, 0], sizes = [12, 112], strides = [1, 1]} : vector<14x112xf32> to vector<12x112xf32>
    %c1_17 = arith.constant 1 : index
    %c0_18 = arith.constant 0 : index
    %c0_19 = arith.constant 0 : index
    %25 = vector.load %arg4[%c1_17, %c0_18, %c0_19] : memref<3x112x128xf32, #tpu.memory_space<vmem>>, vector<1x112x128xf32>
    %26 = vector.shape_cast %25 : vector<1x112x128xf32> to vector<112x128xf32>
    %cst_20 = arith.constant dense<0.000000e+00> : vector<12x128xf32>
    %27 = tpu.matmul %24, %26, %cst_20 {dimension_numbers = #tpu.dot_dimension_numbers<[1], [0], [0], [1], [0, 0, 1, 1], [], []>} : vector<12x112xf32>, vector<112x128xf32>, vector<12x128xf32> -> vector<12x128xf32>
    %28 = arith.addf %23, %27 : vector<12x128xf32>
    %29 = vector.extract_strided_slice %19 {offsets = [2, 0], sizes = [12, 112], strides = [1, 1]} : vector<14x112xf32> to vector<12x112xf32>
    %c2_21 = arith.constant 2 : index
    %c0_22 = arith.constant 0 : index
    %c0_23 = arith.constant 0 : index
    %30 = vector.load %arg4[%c2_21, %c0_22, %c0_23] : memref<3x112x128xf32, #tpu.memory_space<vmem>>, vector<1x112x128xf32>
    %31 = vector.shape_cast %30 : vector<1x112x128xf32> to vector<112x128xf32>
    %cst_24 = arith.constant dense<0.000000e+00> : vector<12x128xf32>
    %32 = tpu.matmul %29, %31, %cst_24 {dimension_numbers = #tpu.dot_dimension_numbers<[1], [0], [0], [1], [0, 0, 1, 1], [], []>} : vector<12x112xf32>, vector<112x128xf32>, vector<12x128xf32> -> vector<12x128xf32>
    %33 = arith.addf %28, %32 : vector<12x128xf32>
    %c0_25 = arith.constant 0 : index
    %c0_26 = arith.constant 0 : index
    %34 = vector.load %arg5[%c0_25, %c0_26] : memref<1x128xf32, #tpu.memory_space<vmem>>, vector<1x128xf32>
    %35 = vector.broadcast %34 : vector<1x128xf32> to vector<12x128xf32>
    %36 = arith.addf %33, %35 : vector<12x128xf32>
    %c0_27 = arith.constant 0 : index
    %c0_28 = arith.constant 0 : index
    %c0_29 = arith.constant 0 : index
    %37 = vector.load %arg6[%c0_27, %c0_28, %c0_29] : memref<1x12x128xf32, #tpu.memory_space<vmem>>, vector<1x12x128xf32>
    %38 = vector.shape_cast %37 : vector<1x12x128xf32> to vector<12x128xf32>
    %39 = vector.shape_cast %36 : vector<12x128xf32> to vector<1x12x128xf32>
    tpu.vector_store %arg6[%c0_27, %c0_28, %c0_29], %39 {strides = array<i32>} : memref<1x12x128xf32, #tpu.memory_space<vmem>>, vector<1x12x128xf32>,
    return
  }
  func.func @transform_0(%arg0: i32) -> (i32, i32) {
    %c0_i32 = arith.constant 0 : i32
    %c0_i32_0 = arith.constant 0 : i32
    return %arg0, %c0_i32 : i32, i32
  }
  func.func @transform_1(%arg0: i32) -> (i32, i32, i32) {
    %c0_i32 = arith.constant 0 : i32
    %c0_i32_0 = arith.constant 0 : i32
    %c0_i32_1 = arith.constant 0 : i32
    %c0_i32_2 = arith.constant 0 : i32
    return %c0_i32, %c0_i32_0, %c0_i32_1 : i32, i32, i32
  }
  func.func @transform_2(%arg0: i32) -> (i32, i32) {
    %c0_i32 = arith.constant 0 : i32
    %c0_i32_0 = arith.constant 0 : i32
    %c0_i32_1 = arith.constant 0 : i32
    return %c0_i32, %c0_i32_0 : i32, i32
  }
  func.func @transform_3(%arg0: i32) -> (i32, i32, i32) {
    %c0_i32 = arith.constant 0 : i32
    %c0_i32_0 = arith.constant 0 : i32
    %c0_i32_1 = arith.constant 0 : i32
    %c0_i32_2 = arith.constant 0 : i32
    return %c0_i32, %c0_i32_0, %c0_i32_1 : i32, i32, i32
  }
  func.func @transform_4(%arg0: i32) -> (i32, i32) {
    %c0_i32 = arith.constant 0 : i32
    %c0_i32_0 = arith.constant 0 : i32
    %c0_i32_1 = arith.constant 0 : i32
    return %c0_i32, %c0_i32_0 : i32, i32
  }
  func.func @transform_5(%arg0: i32) -> (i32, i32, i32) {
    %c0_i32 = arith.constant 0 : i32
    %c0_i32_0 = arith.constant 0 : i32
    %c0_i32_1 = arith.constant 0 : i32
    return %arg0, %c0_i32, %c0_i32_0 : i32, i32, i32
  }
}

</mosaic_0001>

<bundles_post_ra>
// kernel: tpu_custom_call.1
= control target key start
LH: loop header
LB: loop body
LE: loop exit
PB: predicated region body
PF: predicated region fallthrough
CT: control target
= control target key end

     0   :  { %10 = vsyncpa [#allocation3], 0  ;;  %s1036_s0 = inlined_call_operand.hbm [shape: f32[32,64], index: 0, kind: input, shape index: {}]   ;;  %s1037_s1 = inlined_call_operand.hbm [shape: f32[3,64,112], index: 1, kind: input, shape index: {}]   ;;  %s1038_s2 = inlined_call_operand.vmem [shape: f32[1,112], index: 2, kind: input, shape index: {}]   ;;  %s1039_s3 = inlined_call_operand.hbm [shape: f32[3,112,128], index: 3, kind: input, shape index: {}]   ;;  %s1040_s4 = inlined_call_operand.vmem [shape: f32[1,128], index: 4, kind: input, shape index: {}]   ;;  %s1041_s5 = inlined_call_operand.vmem [shape: f32[2,12,128], index: 5, kind: output, shape index: {}]  }
   0x1   :  { %12 = vsyncpa [#allocation3 + $0x1], 0 }
   0x2   :  { %13 = vsyncpa [#allocation5], 0  ;;  %s899_s18 = smov 0   ;;  %s901_s19 = smov 0  }
   0x3   :  { %s903_s20 = smov 0   ;;  %s905_s21 = smov 0  }
   0x4 LB: > { %s918_s22 = sadd.s32 4294967295, %s863_s21   ;;  %p39_p0 = scmp.ne.s32.totalorder %s855_s19, %s851_s18  ;;  %s863_s21 = sphi %s905_s21, %s1048_s21   ;;  %s859_s20 = sphi %s903_s20, %s1047_s20   ;;  %s855_s19 = sphi %s901_s19, %s1046_s19   ;;  %s851_s18 = sphi %s899_s18, %s1045_s18  }
   0x5   : > { %p40_p1 = scmp.eq.s32.totalorder %s918_s22, 0  ;;  %p642_p2 = scmp.ge.s32.totalorder %s863_s21, 1 }
   0x6   : > { %p160_p3 = scmp.lt.s32.totalorder %s863_s21, 3  ;;  %s171_s26 = sshll.u32 %s1037_s1, 4  ;;  %s172_s26 = int_to_ptr.hbm [resolvable:$true] %s171_s26 }
   0x7   : > { %p926_p4 = por %p40_p1, %p39_p0  ;;  %s865_s28 = smov [#allocation4]  }
   0x8   : > { %p933_p5 = pnand %p642_p2, %p160_p3  ;;  %s173_s29 = sshll.u32 %s865_s28, 4  ;;  %s174_s29 = int_to_ptr.vmem [resolvable:$true] %s173_s29 }
   0x9   : > { %s188_s7 = sshll.u32 %s1039_s3, 4  ;;  %s866_s8 = smov 128   ;;  %s189_s7 = int_to_ptr.hbm [resolvable:$true] %s188_s7 }
   0xa   : > { %p681_p6 = pneg %p933_p5  ;;  %s867_s9 = smov 8  }
   0xb   : > { %s868_s10 = smov [#allocation6]   ;;  %s951_s12 = sadd.s32 1, %s863_s21  }
   0xc   : > { %p682_p7 = pnand %p681_p6, %p40_p1  ;;  %s190_s11 = sshll.u32 %s868_s10, 4  ;;  %s191_s11 = int_to_ptr.vmem [resolvable:$true] %s190_s11 }
   0xd   : > { %s26_s13 = sadd.s32 1, %s859_s20  ;;  %s23_s14 = ssub.s32 %s863_s21, %s951_s12 }
   0xe   : > { %684 = dma.hbm_to_vmem [thread:$0]  (!%p682_p7), %s172_s26, 3072, %s174_s29, [#allocation5], %s866_s8, %s866_s8, %s867_s9  }
   0xf   : > { %687 = dma.hbm_to_vmem [thread:$0]  (!%p682_p7), %s189_s7, 5376, %s191_s11, [#allocation5], %s866_s8, %s866_s8, %s867_s9  }
  0x10   : > { %p33_p8 = scmp.ne.s32.totalorder %s859_s20, %s855_s19  ;;  %p24_p9 = scmp.eq.s32.totalorder %s23_s14, 0 }
  0x11   : > { %p34_p10 = scmp.eq.s32.totalorder %s863_s21, 0  ;;  %s207_s15 = sand.u32 1, %s859_s20  }
  0x12   : > { %s961_s16 = scalar_select %p24_p9, %s859_s20, %s26_s13  }
  0x13   : > { %p35_p11 = por %p34_p10, %p33_p8  ;;  %p694_p12 = scmp.lt.s32.totalorder %s863_s21, 2 }
  0x14   : > { %s646_s17 = sshll.u32 %s207_s15, 4  ;;  %s669_s18 = sshll.u32 %s863_s21, 4 }
  0x15   : > { %s216_s26 = scalar_lea.hbm %s1036_s0, %s669_s18  ;;  %s211_s29 = scalar_lea.vmem [#allocation2], %s646_s17 }
  0x16   : > { %s217_s28 = sshll.u32 %s216_s26, 4  ;;  %s219_s30 = sshll.u32 %s211_s29, 4  ;;  %s218_s28 = int_to_ptr.hbm [resolvable:$true] %s217_s28  ;;  %s220_s30 = int_to_ptr.vmem [resolvable:$true] %s219_s30 }
  0x17   : > { %p968_p13 = pnand %p694_p12, %p35_p11  ;;  %s208_s7 = scalar_lea.sflag [#allocation3], %s207_s15 }
  0x18   : > { %s795_s10 = sshra.s32 %s218_s28, 4  ;;  %s802_s14 = scalar_lea.hbm %s1036_s0, 32  ;;  %s796_s10 = int_to_ptr.hbm [resolvable:$true] %s795_s10 }
  0x19   : > { %s797_s11 = scalar_lea.hbm %s796_s10, 16  ;;  %p799_p2 = pneg %p968_p13 }
  0x1a   : > { %p798_p0 = scmp.ne.s32.totalorder %s796_s10, %s797_s11  ;;  %p803_p7 = scmp.lt.s32.totalorder %s796_s10, %s1036_s0 }
  0x1b   : > { %p804_p8 = scmp.lt.s32.totalorder %s802_s14, %s797_s11 }
  0x1c   : > { %p800_p3 = pnand %p799_p2, %p798_p0 }
  0x1d   : > { %p805_p9 = por %p804_p8, %p803_p7 }
  0x1e   : > { %p801_p6 = pneg %p800_p3 }
  0x20   : > { %p806_p10 = pnand %p805_p9, %p801_p6 }
  0x22   : > { %809 = shalt.err (!%p806_p10)
}
  0x23   : > { %691 = dma.hbm_to_vmem [thread:$0]  (!%p968_p13), %s218_s28, 256, %s220_s30, %s208_s7, %s866_s8, %s866_s8, %s867_s9  }
  0x24   : > { %231 = sbr.rel (%p933_p5) target bundleno = 372 (0x174), region = 40  ;;  %s233_s15 = sand.u32 (!%p933_p5), 1, %s855_s19  }
  0x25   : > { %s650_s24 = sshll.u32 (!%p933_p5), %s233_s15, 4  ;;  %s234_s25 = scalar_lea.sflag (!%p933_p5), [#allocation3], %s233_s15 }
  0x26   : > { %s237_s26 = scalar_lea.vmem (!%p933_p5), [#allocation2], %s650_s24 }
  0x29   : > { %842 = dma.done.wait (%p926_p4), %s234_s25, 256  }
  0x2a   : > { %844 = vsyncadd (%p926_p4), %s234_s25, 4294967040 }
  0x2b   : > { %846 = dma.done.wait (%p40_p1), [#allocation5], 8448  }
  0x2c   : > { %848 = vsyncadd (%p40_p1), [#allocation5], 4294958848  ;;  %v299_v0 = vld [vmem:[#allocation4 + $0x78] sm:$0xff]  ;;  %v298_v1 = vld [vmem:[#allocation4 + $0x70] sm:$0xff]  ;;  %vm302_vm0 = vcmask 1046528   ;;  %vm306_vm1 = vcmask 523264  }
  0x2d   : > { %319 = vmatpush.msra.mxu2 %v299_v0  ;;  %v290_v2 = vld [vmem:[#allocation4 + $0x38] sm:$0xff]  ;;  %v297_v3 = vld [vmem:[#allocation4 + $0x68] sm:$0xff]  ;;  %v289_v4 = vld [vmem:[#allocation4 + $0x30] sm:$0xff]  ;;  %vm370_vm2 = vcmask 1045504   ;;  %vm445_vm3 = vcmask 916480   ;;  %p276_p1 = scmp.lt.s32.totalorder %s918_s22, 1 }
  0x2e   : > { %346 = vmatpush.msra.mxu1 %v290_v2  ;;  %v288_v5 = vld [vmem:[#allocation4 + $0x28] sm:$0xff]  ;;  %v296_v6 = vld [vmem:[#allocation4 + $0x60] sm:$0xff]  ;;  %v295_v9 = vld [vmem:[#allocation4 + $0x58] sm:$0xff] }
  0x2f   : > { %320 = vmatpush.msra.mxu2 %v298_v1  ;;  %v287_v7 = vld [vmem:[#allocation4 + $0x20] sm:$0xff]  ;;  %v282_v10 = vld [vmem:[%s237_s26 + $0x8] sm:$0xff]  ;;  %v294_v12 = vld [vmem:[#allocation4 + $0x50] sm:$0xff]  ;;  %s1050_s22 = smov (!%p276_p1, %s918_s22), 1 }
  0x30   : > { %347 = vmatpush.msra.mxu1 %v289_v4  ;;  %v281_v8 = vld [vmem:[%s237_s26] sm:$0xff]  ;;  %v286_v11 = vld [vmem:[#allocation4 + $0x18] sm:$0xff]  ;;  %v424_v15 = vld [vmem:[#allocation6 + $0x68] sm:$0xff]  ;;  %v304_v16 = vrot.slane %v282_v10, 1  ;;  %v372_v30 = vrot.slane %v282_v10, 2  ;;  %s670_s8 = sshll.u32 %s1050_s22, 4 }
  0x31   : > { %321 = vmatpush.msra.mxu2 %v297_v3  ;;  %v303_v13 = vrot.slane %v281_v8, 1  ;;  %v285_v14 = vld [vmem:[#allocation4 + $0x10] sm:$0xff]  ;;  %479 = vmatpush.msra.mxu0 %v424_v15  ;;  %v423_v17 = vld [vmem:[#allocation6 + $0x60] sm:$0xff]  ;;  %v293_v18 = vld [vmem:[#allocation4 + $0x48] sm:$0xff]  ;;  %v371_v29 = vrot.slane %v281_v8, 2  ;;  %s280_s6 = scalar_lea.vmem %s1041_s5, %s670_s8 }
  0x32   : > { %348 = vmatpush.msra.mxu1 %v288_v5  ;;  %v284_v19 = vld [vmem:[#allocation4 + $0x8] sm:$0xff]  ;;  %v292_v20 = vld [vmem:[#allocation4 + $0x40] sm:$0xff]  ;;  %v369_v23 = vld [vmem:[#allocation4 + $0xb8] sm:$0xff] }
  0x33   : > { %322 = vmatpush.msra.mxu2 %v296_v6  ;;  %480 = vmatpush.msra.mxu0 %v423_v17  ;;  %v305_v21 = vsel %vm302_vm0, %v303_v13, %v304_v16  ;;  %v283_v22 = vld [vmem:[#allocation4] sm:$0xff]  ;;  %v368_v24 = vld [vmem:[#allocation4 + $0xb0] sm:$0xff]  ;;  %v367_v25 = vld [vmem:[#allocation4 + $0xa8] sm:$0xff]  ;;  %v373_v33 = vsel %vm370_vm2, %v371_v29, %v372_v30 }
  0x34   : > { %349 = vmatpush.msra.mxu1 %v287_v7  ;;  %v366_v26 = vld [vmem:[#allocation4 + $0xa0] sm:$0xff]  ;;  %v365_v27 = vld [vmem:[#allocation4 + $0x98] sm:$0xff]  ;;  %v364_v28 = vld [vmem:[#allocation4 + $0x90] sm:$0xff] }
  0x35   : > { %323 = vmatpush.msra.mxu2 %v295_v9  ;;  %v363_v31 = vld [vmem:[#allocation4 + $0x88] sm:$0xff]  ;;  %v362_v32 = vld [vmem:[#allocation4 + $0x80] sm:$0xff]  ;;  %v422_v34 = vld [vmem:[#allocation6 + $0x58] sm:$0xff] }
  0x36   : > { %350 = vmatpush.msra.mxu1 %v286_v11  ;;  %481 = vmatpush.msra.mxu0 %v422_v34  ;;  %v421_v35 = vld [vmem:[#allocation6 + $0x50] sm:$0xff]  ;;  %v420_v36 = vld [vmem:[#allocation6 + $0x48] sm:$0xff]  ;;  %v439_v37 = vld [vmem:[#allocation6 + $0xd8] sm:$0xff] }
  0x37   : > { %324 = vmatpush.msra.mxu2 %v294_v12  ;;  %v514_v38 = vld [vmem:[#allocation6 + $0x148] sm:$0xff]  ;;  %v419_v39 = vld [vmem:[#allocation6 + $0x40] sm:$0xff]  ;;  %452 = vmatpush.msra.mxu3 %v439_v37  ;;  %v418_v40 = vld [vmem:[#allocation6 + $0x38] sm:$0xff] }
  0x38   : > { %351 = vmatpush.msra.mxu1 %v285_v14  ;;  %482 = vmatpush.msra.mxu0 %v421_v35  ;;  %v438_v41 = vld [vmem:[#allocation6 + $0xd0] sm:$0xff]  ;;  %v513_v42 = vld [vmem:[#allocation6 + $0x140] sm:$0xff]  ;;  %v437_v44 = vld [vmem:[#allocation6 + $0xc8] sm:$0xff] }
  0x39   : > { %325 = vmatpush.msra.mxu2 %v293_v18  ;;  %453 = vmatpush.msra.mxu3 %v438_v41  ;;  %v417_v43 = vld [vmem:[#allocation6 + $0x30] sm:$0xff]  ;;  %v512_v45 = vld [vmem:[#allocation6 + $0x138] sm:$0xff]  ;;  %v416_v46 = vld [vmem:[#allocation6 + $0x28] sm:$0xff] }
  0x3a   : > { %352 = vmatpush.msra.mxu1 %v284_v19  ;;  %483 = vmatpush.msra.mxu0 %v420_v36  ;;  %v436_v47 = vld [vmem:[#allocation6 + $0xc0] sm:$0xff]  ;;  %v511_v48 = vld [vmem:[#allocation6 + $0x130] sm:$0xff]  ;;  %v435_v50 = vld [vmem:[#allocation6 + $0xb8] sm:$0xff] }
  0x3b   : > { %326 = vmatpush.msra.mxu2 %v292_v20  ;;  %454 = vmatpush.msra.mxu3 %v437_v44  ;;  %v415_v49 = vld [vmem:[#allocation6 + $0x20] sm:$0xff]  ;;  %v510_v51 = vld [vmem:[#allocation6 + $0x128] sm:$0xff]  ;;  %v414_v52 = vld [vmem:[#allocation6 + $0x18] sm:$0xff] }
  0x3c   : > { %655 = vmatmul.msk.f32.vlgmr.msra.gmra.mxu2 %vm306_vm1, %v305_v21  ;;  %353 = vmatpush.msra.mxu1 %v283_v22  ;;  %v434_v53 = vld [vmem:[#allocation6 + $0xb0] sm:$0xff]  ;;  %v509_v54 = vld [vmem:[#allocation6 + $0x120] sm:$0xff]  ;;  %v433_v56 = vld [vmem:[#allocation6 + $0xa8] sm:$0xff] }
  0x3d   : > { %386 = vmatpush.msrb.mxu2 %v369_v23  ;;  %657 = vmatmul.msk.f32.vlgmr.msra.gmra.mxu1 %vm306_vm1, %v281_v8  ;;  %v413_v55 = vld [vmem:[#allocation6 + $0x10] sm:$0xff]  ;;  %v508_v57 = vld [vmem:[#allocation6 + $0x118] sm:$0xff]  ;;  %v412_v58 = vld [vmem:[#allocation6 + $0x8] sm:$0xff] }
  0x3e   : > { %524 = vmatpush.msrb.mxu1 %v514_v38  ;;  %484 = vmatpush.msra.mxu0 %v419_v39  ;;  %v432_v59 = vld [vmem:[#allocation6 + $0xa0] sm:$0xff]  ;;  %v507_v60 = vld [vmem:[#allocation6 + $0x110] sm:$0xff]  ;;  %v431_v62 = vld [vmem:[#allocation6 + $0x98] sm:$0xff] }
  0x3f   : > { %387 = vmatpush.msrb.mxu2 %v368_v24  ;;  %455 = vmatpush.msra.mxu3 %v436_v47  ;;  %v411_v61 = vld [vmem:[#allocation6] sm:$0xff]  ;;  %v506_v63 = vld [vmem:[#allocation6 + $0x108] sm:$0xff]  ;;  %v430_v0 = vld [vmem:[#allocation6 + $0x90] sm:$0xff] }
  0x40   : > { %485 = vmatpush.msra.mxu0 %v418_v40  ;;  %525 = vmatpush.msrb.mxu1 %v513_v42  ;;  %v505_v1 = vld [vmem:[#allocation6 + $0x100] sm:$0xff]  ;;  %v429_v2 = vld [vmem:[#allocation6 + $0x88] sm:$0xff]  ;;  %v504_v3 = vld [vmem:[#allocation6 + $0xf8] sm:$0xff] }
  0x41   : > { %388 = vmatpush.msrb.mxu2 %v367_v25  ;;  %456 = vmatpush.msra.mxu3 %v435_v50  ;;  %v428_v4 = vld [vmem:[#allocation6 + $0x80] sm:$0xff]  ;;  %v503_v5 = vld [vmem:[#allocation6 + $0xf0] sm:$0xff]  ;;  %v427_v6 = vld [vmem:[#allocation6 + $0x78] sm:$0xff] }
  0x42   : > { %486 = vmatpush.msra.mxu0 %v417_v43  ;;  %526 = vmatpush.msrb.mxu1 %v512_v45  ;;  %v502_v7 = vld [vmem:[#allocation6 + $0xe8] sm:$0xff]  ;;  %v426_v8 = vld [vmem:[#allocation6 + $0x70] sm:$0xff]  ;;  %v501_v9 = vld [vmem:[#allocation6 + $0xe0] sm:$0xff] }
  0x43   : > { %389 = vmatpush.msrb.mxu2 %v366_v26  ;;  %457 = vmatpush.msra.mxu3 %v434_v53  ;;  %v733_v14 = vld [vmem:[%s1038_s2] ss:$0 sm:$0xff] }
  0x44   : > { %656 = vmatmul.msk.f32.gmra.mxu2 %vm306_vm1, %v304_v16  ;;  %487 = vmatpush.msra.mxu0 %v416_v46  ;;  %v734_v35 = vld [vmem:[%s1040_s4] ss:$0 sm:$0xff] }
  0x45   : > { %390 = vmatpush.msrb.mxu2 %v365_v27  ;;  %658 = vmatmul.msk.f32.gmra.mxu1 %vm306_vm1, %v282_v10 }
  0x46   : > { %527 = vmatpush.msrb.mxu1 %v511_v48  ;;  %488 = vmatpush.msra.mxu0 %v415_v49 }
  0x47   : > { %391 = vmatpush.msrb.mxu2 %v364_v28  ;;  %458 = vmatpush.msra.mxu3 %v433_v56 }
  0x48   : > { %528 = vmatpush.msrb.mxu1 %v510_v51  ;;  %489 = vmatpush.msra.mxu0 %v414_v52 }
  0x49   : > { %392 = vmatpush.msrb.mxu2 %v363_v31  ;;  %459 = vmatpush.msra.mxu3 %v432_v59 }
  0x4a   : > { %529 = vmatpush.msrb.mxu1 %v509_v54  ;;  %490 = vmatpush.msra.mxu0 %v413_v55 }
  0x4b   : > { %393 = vmatpush.msrb.mxu2 %v362_v32  ;;  %460 = vmatpush.msra.mxu3 %v431_v62 }
  0x4c   : > { %659 = vmatmul.msk.f32.vlgmr.msrb.gmra.mxu2 %vm306_vm1, %v373_v33  ;;  %530 = vmatpush.msrb.mxu1 %v508_v57 }
  0x4d   : > { %491 = vmatpush.msra.mxu0 %v412_v58  ;;  %461 = vmatpush.msra.mxu3 %v430_v0 }
  0x4e   : > { %531 = vmatpush.msrb.mxu1 %v507_v60 }
  0x4f   : > { %492 = vmatpush.msra.mxu0 %v411_v61  ;;  %462 = vmatpush.msra.mxu3 %v429_v2 }
  0x50   : > { %532 = vmatpush.msrb.mxu1 %v506_v63 }
  0x51   : > { %463 = vmatpush.msra.mxu3 %v428_v4 }
  0x52   : > { %533 = vmatpush.msrb.mxu1 %v505_v1 }
  0x53   : > { %464 = vmatpush.msra.mxu3 %v427_v6 }
  0x54   : > { %660 = vmatmul.msk.f32.gmra.mxu2 %vm306_vm1, %v372_v30  ;;  %534 = vmatpush.msrb.mxu1 %v504_v3 }
  0x55   : > { %465 = vmatpush.msra.mxu3 %v426_v8 }
  0x56   : > { %535 = vmatpush.msrb.mxu1 %v503_v5 }
  0x58   : > { %536 = vmatpush.msrb.mxu1 %v502_v7 }
  0x5a   : > { %537 = vmatpush.msrb.mxu1 %v501_v9 }
  0xba   : > { %v355_v12 = vpop.f32.mrf.mxu1 }
  0xbf   : > { %v328_v10 = vpop.f32.mrf.mxu2 }
  0xc0   : > { %v356_v13 = vadd.f32 %v355_v12, %v328_v10 }
  0xc2   : > { %v358_v18 = vpop.f32.mrf.mxu1 }
  0xc7   : > { %v331_v11 = vpop.f32.mrf.mxu2 }
  0xc8   : > { %v359_v20 = vadd.f32 %v358_v18, %v331_v11 }
  0xcf   : > { %v395_v15 = vpop.f32.mrf.mxu2 }
  0xd0   : > { %v401_v16 = vadd.f32 %v395_v15, %v356_v13 }
  0xd2   : > { %v407_v17 = vadd.f32 %v733_v14, %v401_v16 }
  0xd4   : > { %v409_v19 = vmax.f32 %v407_v17, 0.0 }
  0xd6   : > { %663 = vmatmul.msk.f32.vlgmr.msra.gmra.mxu0 %vm445_vm3, %v409_v19  ;;  %v515_v25 = vrot.slane %v409_v19, 2  ;;  %v442_v27 = vrot.slane %v409_v19, 1 }
  0xd7   : > { %v398_v21 = vpop.f32.mrf.mxu2 }
  0xd8   : > { %v402_v22 = vadd.f32 %v398_v21, %v359_v20 }
  0xda   : > { %v408_v23 = vadd.f32 %v733_v14, %v402_v22 }
  0xdc   : > { %v410_v24 = vmax.f32 %v408_v23, 0.0 }
  0xde   : > { %v516_v26 = vrot.slane %v410_v24, 2  ;;  %664 = vmatmul.msk.f32.gmra.mxu0 %vm445_vm3, %v410_v24  ;;  %v443_v28 = vrot.slane %v410_v24, 1 }
  0xe0   : > { %v444_v29 = vsel %vm302_vm0, %v442_v27, %v443_v28  ;;  %v517_v30 = vsel %vm370_vm2, %v515_v25, %v516_v26 }
  0xe1   : > { %661 = vmatmul.msk.f32.vlgmr.msra.gmra.mxu3 %vm445_vm3, %v444_v29  ;;  %665 = vmatmul.msk.f32.vlgmr.msrb.gmra.mxu1 %vm445_vm3, %v517_v30 }
  0xe9   : > { %662 = vmatmul.msk.f32.gmra.mxu3 %vm445_vm3, %v443_v28  ;;  %666 = vmatmul.msk.f32.gmra.mxu1 %vm445_vm3, %v516_v26 }
 0x153   : > { %v494_v31 = vpop.f32.mrf.mxu0 }
 0x15b   : > { %v497_v38 = vpop.f32.mrf.mxu0 }
 0x15e   : > { %v539_v32 = vpop.f32.mrf.mxu1 }
 0x164   : > { %v467_v33 = vpop.f32.mrf.mxu3 }
 0x165   : > { %v495_v34 = vadd.f32 %v494_v31, %v467_v33 }
 0x166   : > { %v542_v41 = vpop.f32.mrf.mxu1 }
 0x167   : > { %v545_v36 = vadd.f32 %v539_v32, %v495_v34 }
 0x169   : > { %v551_v37 = vadd.f32 %v734_v35, %v545_v36 }
 0x16b   : > { %553 = vst [vmem:[%s280_s6] sm:$0xff] %v551_v37 }
 0x16c   : > { %v470_v39 = vpop.f32.mrf.mxu3 }
 0x16d   : > { %v498_v40 = vadd.f32 %v497_v38, %v470_v39 }
 0x16f   : > { %v546_v42 = vadd.f32 %v542_v41, %v498_v40 }
 0x171   : > { %v552_v43 = vadd.f32 %v734_v35, %v546_v42 }
 0x173   : > { %554 = vst [vmem:[%s280_s6 + $0x8] sm:$0xf] %v552_v43 }
 0x174 PF: > { %p16_p4 = scmp.ge.s32.totalorder %s951_s12, 4   ;;  %s1045_s18 = smov %s855_s19 }
 0x175   : > { %s1046_s19 = smov %s859_s20  ;;  %s1047_s20 = smov %s961_s16 }
 0x176   : > { %s1048_s21 = smov %s951_s12  ;;  %18 = sbr.rel (!%p16_p4) target bundleno = 4 (0x4), region = 92 }
 0x17b   :  { %576 = vsyncpa [#allocation3], 1 }
 0x17c   :  { %578 = vsyncpa [#allocation3 + $0x1], 1 }
 0x17d   :  { %579 = vsyncpa [#allocation5], 1 }

</bundles_post_ra>
